<compile_context>
chip_gen: v6e
topology: v6e:2x2x1
jax: 0.10.0
libtpu: 0.0.40
codegen_flags: <defaults>
</compile_context>

<pallas_src>
import functools

import jax
import jax.numpy as jnp
from jax import lax
from jax.experimental import pallas as pl
from jax.experimental.pallas import tpu as pltpu

LN_EPS = 1e-5


def _round_up(x, m):
    return (x + m - 1) // m * m


def _layernorm(h, gamma, beta, inv_n):
    # Single-pass LN (sum / sum-of-squares). Padded lanes of h are exactly 0 and
    # gamma/beta are zero-padded, so dividing by the TRUE feature count (inv_n)
    # gives the correct mean/variance and padded output lanes stay 0.
    s = jnp.sum(h, axis=-1, keepdims=True)
    ss = jnp.sum(h * h, axis=-1, keepdims=True)
    mu = s * inv_n
    var = jnp.maximum(ss * inv_n - mu * mu, 0.0)   # guard vs cancellation
    return (h - mu) * lax.rsqrt(var + LN_EPS) * gamma + beta


def cls_decoder_kernel(x_ref,
                       w1_ref, b1_ref, g1_ref, bt1_ref,
                       w2_ref, b2_ref, g2_ref, bt2_ref,
                       w3_ref, b3_ref,
                       o_ref, *, inv_hidden, sub_tiles):
    # Hoist resident params to values once per grid step.
    w1 = w1_ref[...]; b1 = b1_ref[...]; g1 = g1_ref[...]; bt1 = bt1_ref[...]
    w2 = w2_ref[...]; b2 = b2_ref[...]; g2 = g2_ref[...]; bt2 = bt2_ref[...]
    w3 = w3_ref[...]; b3 = b3_ref[...]

    tb = x_ref.shape[0]
    st = tb // sub_tiles

    # Static unroll over independent sub-tiles: separate dependency chains let
    # the scheduler overlap one sub-tile's LayerNorm/ReLU (VPU/EUP/XLU) with the
    # other's matmuls (MXU).
    for s in range(sub_tiles):
        r0 = s * st
        xs = x_ref[pl.ds(r0, st), :].astype(jnp.bfloat16)

        # Block 1: Linear -> ReLU -> LayerNorm  (bf16 operands, f32 accumulate)
        h = jnp.dot(xs, w1, preferred_element_type=jnp.float32) + b1
        h = jnp.maximum(h, 0.0)
        h = _layernorm(h, g1, bt1, inv_hidden)

        # Block 2: Linear -> ReLU -> LayerNorm
        h = jnp.dot(h.astype(jnp.bfloat16), w2,
                    preferred_element_type=jnp.float32) + b2
        h = jnp.maximum(h, 0.0)
        h = _layernorm(h, g2, bt2, inv_hidden)

        # Output Linear (lane-dense padded output)
        out = jnp.dot(h.astype(jnp.bfloat16), w3,
                      preferred_element_type=jnp.float32) + b3
        o_ref[pl.ds(r0, st), :] = out.astype(o_ref.dtype)


def prepare_params(params):
    """Pad + cast parameters ONCE (outside the per-call hot path).

    Weights go to bf16 (MXU operands), biases / LN params stay f32. Every
    feature dim is zero-padded to a multiple of 128 lanes.
    """
    d_model, hidden = params["w1"].shape
    n_cls = params["w3"].shape[1]
    d_pad, h_pad, c_pad = (_round_up(v, 128) for v in (d_model, hidden, n_cls))
    f32, bf16 = jnp.float32, jnp.bfloat16

    def pad2(a, rows, cols, dtype):
        return jnp.pad(a, ((0, rows - a.shape[0]),
                           (0, cols - a.shape[1]))).astype(dtype)

    return {
        "w1": pad2(params["w1"], d_pad, h_pad, bf16),
        "b1": pad2(params["b1"], 1, h_pad, f32),
        "g1": pad2(params["g1"], 1, h_pad, f32),
        "bt1": pad2(params["bt1"], 1, h_pad, f32),
        "w2": pad2(params["w2"], h_pad, h_pad, bf16),
        "b2": pad2(params["b2"], 1, h_pad, f32),
        "g2": pad2(params["g2"], 1, h_pad, f32),
        "bt2": pad2(params["bt2"], 1, h_pad, f32),
        "w3": pad2(params["w3"], h_pad, c_pad, bf16),
        "b3": pad2(params["b3"], 1, c_pad, f32),
        "dims": (d_model, hidden, n_cls, d_pad, h_pad, c_pad),
    }


def _default_batch_tile(B):
    # >= 16 rows (bf16 packs 16 sublanes / vreg). For medium/large B, aim for at
    # least 2 grid steps (v7x megacore + pipeline overlap); multiples of 256 for
    # big batches (MXU row dimension), capped at 512.
    if B <= 16:
        return 16
    if B <= 64:
        return _round_up(B, 16)
    half = -(-B // 2)
    if half >= 256:
        return min(512, _round_up(half, 256))
    return _round_up(half, 16)


def cls_decoder_forward(x, prepared, *, batch_tile=None, sub_tiles=None,
                        out_dtype=jnp.float32):
    """ClsDecoder forward. x: (B, d_model) f32; prepared: output of prepare_params."""
    d_model, hidden, n_cls, d_pad, h_pad, c_pad = prepared["dims"]
    B = x.shape[0]
    assert x.shape[1] == d_model

    # Resident (single-buffered) weight footprint.
    weights_bytes = (d_pad * h_pad + h_pad * h_pad + h_pad * c_pad) * 2 \
        + (6 * h_pad + c_pad) * 4
    if weights_bytes > (40 << 20):
        # TODO(synk): stream w1/w2 across a K-tiled "arbitrary" grid axis instead
        # of keeping all weights resident (needed once bf16 weights exceed ~40 MiB,
        # e.g. on v7x's 64 MiB per-TensorCore VMEM).
        raise NotImplementedError("resident-weight path needs bf16 weights <= 40 MiB")

    # Generation-aware VMEM budget (leave compiler headroom: ~54 MiB on v7x,
    # ~108 MiB on v5e/v6e physical capacity).
    try:
        vmem_cap = int(pltpu.get_tpu_info().vmem_capacity_bytes)
    except Exception:
        vmem_cap = 64 << 20
    vmem_budget = int(vmem_cap * 0.85)

    out_bytes = jnp.dtype(out_dtype).itemsize

    def vmem_need(tb_, x_bytes_):
        io = tb_ * d_pad * x_bytes_ + tb_ * c_pad * out_bytes
        acts = 3 * tb_ * h_pad * 4                       # f32 activations
        return weights_bytes + 2 * io + acts + (2 << 20)  # IO double-buffered

    if batch_tile is None:
        tb = _default_batch_tile(B)
        # Shrink the batch tile (never evict weights) if VMEM is tight.
        while vmem_need(tb, 4) > vmem_budget and tb > 16:
            tb = max(16, tb // 2)
    else:
        tb = int(batch_tile)
        assert tb % 8 == 0, "batch_tile must be a multiple of 8"

    B_pad = _round_up(B, tb)
    grid = (B_pad // tb,)

    # x: avoid an extra HBM pass when no padding is needed — pass f32 through and
    # cast to bf16 inside the kernel. When padding is needed, pad+cast to bf16 in
    # one fused XLA op.
    if (d_pad != d_model) or (B_pad != B):
        xb = jnp.pad(x, ((0, B_pad - B), (0, d_pad - d_model))).astype(jnp.bfloat16)
        x_bytes = 2
    else:
        xb = x
        x_bytes = x.dtype.itemsize

    if sub_tiles is None:
        sub_tiles = 2 if (tb >= 256 and hidden >= 512) else 1
    if tb % (8 * sub_tiles) != 0:
        sub_tiles = 1

    # Resident params: constant index_map -> single-buffer (no re-fetch needed).
    def const_spec(shape):
        index_map = lambda i: (0,) * len(shape)
        try:
            return pl.BlockSpec(shape, index_map, pipeline_mode=pl.Buffered(1))
        except TypeError:  # older jax without pipeline_mode kwarg
            return pl.BlockSpec(shape, index_map)

    in_specs = [
        pl.BlockSpec((tb, d_pad), lambda i: (i, 0)),   # x  (tiled over batch)
        const_spec((d_pad, h_pad)),                    # w1 (resident)
        const_spec((1, h_pad)),                        # b1
        const_spec((1, h_pad)),                        # gamma1
        const_spec((1, h_pad)),                        # beta1
        const_spec((h_pad, h_pad)),                    # w2 (resident)
        const_spec((1, h_pad)),                        # b2
        const_spec((1, h_pad)),                        # gamma2
        const_spec((1, h_pad)),                        # beta2
        const_spec((h_pad, c_pad)),                    # w3 (resident)
        const_spec((1, c_pad)),                        # b3
    ]
    out_specs = pl.BlockSpec((tb, c_pad), lambda i: (i, 0))

    vmem_limit = int(min(max(vmem_need(tb, x_bytes), 16 << 20), vmem_budget))

    cost = pl.CostEstimate(
        flops=2 * B_pad * (d_pad * h_pad + h_pad * h_pad + h_pad * c_pad),
        transcendentals=2 * B_pad,  # one rsqrt per row per LayerNorm
        bytes_accessed=B_pad * d_pad * x_bytes + weights_bytes
        + B_pad * c_pad * out_bytes,
    )

    out_padded = pl.pallas_call(
        functools.partial(cls_decoder_kernel,
                          inv_hidden=1.0 / hidden, sub_tiles=sub_tiles),
        out_shape=jax.ShapeDtypeStruct((B_pad, c_pad), out_dtype),
        grid=grid,
        in_specs=in_specs,
        out_specs=out_specs,
        compiler_params=pltpu.CompilerParams(
            dimension_semantics=("parallel",),
            vmem_limit_bytes=vmem_limit),
        cost_estimate=cost,
    )(xb, prepared["w1"], prepared["b1"], prepared["g1"], prepared["bt1"],
      prepared["w2"], prepared["b2"], prepared["g2"], prepared["bt2"],
      prepared["w3"], prepared["b3"])

    # Slice off batch / class padding only when it was actually added.
    if (B_pad != B) or (c_pad != n_cls):
        return out_padded[:B, :n_cls]
    return out_padded


def init_params(key, d_model, hidden_dim, n_cls):
    """Deterministic synthetic parameter init (shapes match the nn.Module)."""
    ks = jax.random.split(key, 6)

    def lin(k, fan_in, fan_out):
        # (in, out) layout -> kernel computes x @ W + b (== x @ W_pt.T + b)
        return jax.random.normal(k, (fan_in, fan_out), jnp.float32) * (fan_in ** -0.5)

    return {
        "w1": lin(ks[0], d_model, hidden_dim),
        "b1": jax.random.normal(ks[1], (1, hidden_dim), jnp.float32) * 0.01,
        "g1": jnp.ones((1, hidden_dim), jnp.float32),
        "bt1": jnp.zeros((1, hidden_dim), jnp.float32),
        "w2": lin(ks[2], hidden_dim, hidden_dim),
        "b2": jax.random.normal(ks[3], (1, hidden_dim), jnp.float32) * 0.01,
        "g2": jnp.ones((1, hidden_dim), jnp.float32),
        "bt2": jnp.zeros((1, hidden_dim), jnp.float32),
        "w3": lin(ks[4], hidden_dim, n_cls),
        "b3": jax.random.normal(ks[5], (1, n_cls), jnp.float32) * 0.01,
    }


def reference_forward(x, p):
    """Pure-JAX f32 reference matching PyTorch semantics."""
    h = x @ p["w1"] + p["b1"]
    h = jnp.maximum(h, 0.0)
    mu = h.mean(-1, keepdims=True)
    var = ((h - mu) ** 2).mean(-1, keepdims=True)
    h = (h - mu) / jnp.sqrt(var + LN_EPS) * p["g1"] + p["bt1"]
    h = h @ p["w2"] + p["b2"]
    h = jnp.maximum(h, 0.0)
    mu = h.mean(-1, keepdims=True)
    var = ((h - mu) ** 2).mean(-1, keepdims=True)
    h = (h - mu) / jnp.sqrt(var + LN_EPS) * p["g2"] + p["bt2"]
    return h @ p["w3"] + p["b3"]


if __name__ == "__main__":
    key = jax.random.PRNGKey(0)
    k_x, k_p, k_x2 = jax.random.split(key, 3)

    batch, d_model, hidden_dim, n_cls = 8, 32, 64, 16
    x = jax.random.normal(k_x, (batch, d_model), jnp.float32)
    params = init_params(k_p, d_model, hidden_dim, n_cls)
    prep = prepare_params(params)   # pad/cast weights ONCE, outside the hot path

    # Single-tile case.
    out = jax.block_until_ready(cls_decoder_forward(x, prep))
    ref = reference_forward(x, params)
    assert out.shape == (batch, n_cls)
    # bf16 matmul operands with f32 accumulation -> loosened tolerance vs f32 ref.
    assert jnp.allclose(out, ref, atol=3e-2, rtol=3e-2), (
        f"max abs err = {jnp.max(jnp.abs(out - ref))}")

    # Multi-tile case (pipelined grid + batch padding + in-kernel sub-tiling).
    batch2 = 24
    x2 = jax.random.normal(k_x2, (batch2, d_model), jnp.float32)
    out2 = jax.block_until_ready(
        cls_decoder_forward(x2, prep, batch_tile=16, sub_tiles=2))
    ref2 = reference_forward(x2, params)
    assert out2.shape == (batch2, n_cls)
    assert jnp.allclose(out2, ref2, atol=3e-2, rtol=3e-2), (
        f"max abs err = {jnp.max(jnp.abs(out2 - ref2))}")

    print("KERNEL_OK")
</pallas_src>

<mosaic_0001>
module attributes {stable_mosaic.version = 11 : i64} {
  func.func @cls_decoder_kernel(%arg0: i32, %arg1: memref<16x128xbf16, #tpu.memory_space<vmem>>, %arg2: memref<128x128xbf16, #tpu.memory_space<vmem>>, %arg3: memref<1x128xf32, #tpu.memory_space<vmem>>, %arg4: memref<1x128xf32, #tpu.memory_space<vmem>>, %arg5: memref<1x128xf32, #tpu.memory_space<vmem>>, %arg6: memref<128x128xbf16, #tpu.memory_space<vmem>>, %arg7: memref<1x128xf32, #tpu.memory_space<vmem>>, %arg8: memref<1x128xf32, #tpu.memory_space<vmem>>, %arg9: memref<1x128xf32, #tpu.memory_space<vmem>>, %arg10: memref<128x128xbf16, #tpu.memory_space<vmem>>, %arg11: memref<1x128xf32, #tpu.memory_space<vmem>>, %arg12: memref<16x128xf32, #tpu.memory_space<vmem>>) attributes {dimension_semantics = [#tpu.dimension_semantics<parallel>], iteration_bounds = array<i64: 1>, scalar_prefetch = 0 : i64, scratch_operands = 0 : i64, tpu.core_type = #tpu.core_type<tc>, window_params = [{transform_indices = @transform_0, window_bounds = array<i64: 16, 128>}, {pipeline_mode = #tpu.pipeline_mode<synchronous>, transform_indices = @transform_1, window_bounds = array<i64: 128, 128>}, {pipeline_mode = #tpu.pipeline_mode<synchronous>, transform_indices = @transform_2, window_bounds = array<i64: 1, 128>}, {pipeline_mode = #tpu.pipeline_mode<synchronous>, transform_indices = @transform_3, window_bounds = array<i64: 1, 128>}, {pipeline_mode = #tpu.pipeline_mode<synchronous>, transform_indices = @transform_4, window_bounds = array<i64: 1, 128>}, {pipeline_mode = #tpu.pipeline_mode<synchronous>, transform_indices = @transform_5, window_bounds = array<i64: 128, 128>}, {pipeline_mode = #tpu.pipeline_mode<synchronous>, transform_indices = @transform_6, window_bounds = array<i64: 1, 128>}, {pipeline_mode = #tpu.pipeline_mode<synchronous>, transform_indices = @transform_7, window_bounds = array<i64: 1, 128>}, {pipeline_mode = #tpu.pipeline_mode<synchronous>, transform_indices = @transform_8, window_bounds = array<i64: 1, 128>}, {pipeline_mode = #tpu.pipeline_mode<synchronous>, transform_indices = @transform_9, window_bounds = array<i64: 128, 128>}, {pipeline_mode = #tpu.pipeline_mode<synchronous>, transform_indices = @transform_10, window_bounds = array<i64: 1, 128>}, {transform_indices = @transform_11, window_bounds = array<i64: 16, 128>}]} {
    %c0 = arith.constant 0 : index
    %c0_0 = arith.constant 0 : index
    %0 = vector.load %arg2[%c0, %c0_0] : memref<128x128xbf16, #tpu.memory_space<vmem>>, vector<128x128xbf16>
    %c0_1 = arith.constant 0 : index
    %c0_2 = arith.constant 0 : index
    %1 = vector.load %arg3[%c0_1, %c0_2] : memref<1x128xf32, #tpu.memory_space<vmem>>, vector<1x128xf32>
    %c0_3 = arith.constant 0 : index
    %c0_4 = arith.constant 0 : index
    %2 = vector.load %arg4[%c0_3, %c0_4] : memref<1x128xf32, #tpu.memory_space<vmem>>, vector<1x128xf32>
    %c0_5 = arith.constant 0 : index
    %c0_6 = arith.constant 0 : index
    %3 = vector.load %arg5[%c0_5, %c0_6] : memref<1x128xf32, #tpu.memory_space<vmem>>, vector<1x128xf32>
    %c0_7 = arith.constant 0 : index
    %c0_8 = arith.constant 0 : index
    %4 = vector.load %arg6[%c0_7, %c0_8] : memref<128x128xbf16, #tpu.memory_space<vmem>>, vector<128x128xbf16>
    %c0_9 = arith.constant 0 : index
    %c0_10 = arith.constant 0 : index
    %5 = vector.load %arg7[%c0_9, %c0_10] : memref<1x128xf32, #tpu.memory_space<vmem>>, vector<1x128xf32>
    %c0_11 = arith.constant 0 : index
    %c0_12 = arith.constant 0 : index
    %6 = vector.load %arg8[%c0_11, %c0_12] : memref<1x128xf32, #tpu.memory_space<vmem>>, vector<1x128xf32>
    %c0_13 = arith.constant 0 : index
    %c0_14 = arith.constant 0 : index
    %7 = vector.load %arg9[%c0_13, %c0_14] : memref<1x128xf32, #tpu.memory_space<vmem>>, vector<1x128xf32>
    %c0_15 = arith.constant 0 : index
    %c0_16 = arith.constant 0 : index
    %8 = vector.load %arg10[%c0_15, %c0_16] : memref<128x128xbf16, #tpu.memory_space<vmem>>, vector<128x128xbf16>
    %c0_17 = arith.constant 0 : index
    %c0_18 = arith.constant 0 : index
    %9 = vector.load %arg11[%c0_17, %c0_18] : memref<1x128xf32, #tpu.memory_space<vmem>>, vector<1x128xf32>
    %c0_19 = arith.constant 0 : index
    %c0_20 = arith.constant 0 : index
    %10 = vector.load %arg1[%c0_19, %c0_20] : memref<16x128xbf16, #tpu.memory_space<vmem>>, vector<16x128xbf16>
    %cst = arith.constant dense<0.000000e+00> : vector<16x128xf32>
    %11 = tpu.matmul %10, %0, %cst {dimension_numbers = #tpu.dot_dimension_numbers<[1], [0], [0], [1], [0, 0, 1, 1], [], []>} : vector<16x128xbf16>, vector<128x128xbf16>, vector<16x128xf32> -> vector<16x128xf32>
    %12 = vector.broadcast %1 : vector<1x128xf32> to vector<16x128xf32>
    %13 = arith.addf %11, %12 : vector<16x128xf32>
    %cst_21 = arith.constant 0.000000e+00 : f32
    %14 = vector.broadcast %cst_21 : f32 to vector<16x128xf32>
    %15 = arith.maximumf %13, %14 : vector<16x128xf32>
    %cst_22 = arith.constant dense<0.000000e+00> : vector<16xf32>
    %16 = vector.multi_reduction <add>, %15, %cst_22 [1] : vector<16x128xf32> to vector<16xf32>
    %17 = vector.shape_cast %16 : vector<16xf32> to vector<16x1xf32>
    %18 = arith.mulf %15, %15 : vector<16x128xf32>
    %cst_23 = arith.constant dense<0.000000e+00> : vector<16xf32>
    %19 = vector.multi_reduction <add>, %18, %cst_23 [1] : vector<16x128xf32> to vector<16xf32>
    %20 = vector.shape_cast %19 : vector<16xf32> to vector<16x1xf32>
    %cst_24 = arith.constant 1.562500e-02 : f32
    %21 = vector.broadcast %cst_24 : f32 to vector<16x1xf32>
    %22 = arith.mulf %17, %21 : vector<16x1xf32>
    %cst_25 = arith.constant 1.562500e-02 : f32
    %23 = vector.broadcast %cst_25 : f32 to vector<16x1xf32>
    %24 = arith.mulf %20, %23 : vector<16x1xf32>
    %25 = arith.mulf %22, %22 : vector<16x1xf32>
    %26 = arith.subf %24, %25 : vector<16x1xf32>
    %cst_26 = arith.constant 0.000000e+00 : f32
    %27 = vector.broadcast %cst_26 : f32 to vector<16x1xf32>
    %28 = arith.maximumf %26, %27 : vector<16x1xf32>
    %29 = vector.broadcast %22 : vector<16x1xf32> to vector<16x128xf32>
    %30 = arith.subf %15, %29 : vector<16x128xf32>
    %cst_27 = arith.constant 9.99999974E-6 : f32
    %31 = vector.broadcast %cst_27 : f32 to vector<16x1xf32>
    %32 = arith.addf %28, %31 : vector<16x1xf32>
    %33 = math.rsqrt %32 : vector<16x1xf32>
    %34 = vector.broadcast %33 : vector<16x1xf32> to vector<16x128xf32>
    %35 = arith.mulf %30, %34 : vector<16x128xf32>
    %36 = vector.broadcast %2 : vector<1x128xf32> to vector<16x128xf32>
    %37 = arith.mulf %35, %36 : vector<16x128xf32>
    %38 = vector.broadcast %3 : vector<1x128xf32> to vector<16x128xf32>
    %39 = arith.addf %37, %38 : vector<16x128xf32>
    %40 = arith.truncf %39 : vector<16x128xf32> to vector<16x128xbf16>
    %cst_28 = arith.constant dense<0.000000e+00> : vector<16x128xf32>
    %41 = tpu.matmul %40, %4, %cst_28 {dimension_numbers = #tpu.dot_dimension_numbers<[1], [0], [0], [1], [0, 0, 1, 1], [], []>} : vector<16x128xbf16>, vector<128x128xbf16>, vector<16x128xf32> -> vector<16x128xf32>
    %42 = vector.broadcast %5 : vector<1x128xf32> to vector<16x128xf32>
    %43 = arith.addf %41, %42 : vector<16x128xf32>
    %cst_29 = arith.constant 0.000000e+00 : f32
    %44 = vector.broadcast %cst_29 : f32 to vector<16x128xf32>
    %45 = arith.maximumf %43, %44 : vector<16x128xf32>
    %cst_30 = arith.constant dense<0.000000e+00> : vector<16xf32>
    %46 = vector.multi_reduction <add>, %45, %cst_30 [1] : vector<16x128xf32> to vector<16xf32>
    %47 = vector.shape_cast %46 : vector<16xf32> to vector<16x1xf32>
    %48 = arith.mulf %45, %45 : vector<16x128xf32>
    %cst_31 = arith.constant dense<0.000000e+00> : vector<16xf32>
    %49 = vector.multi_reduction <add>, %48, %cst_31 [1] : vector<16x128xf32> to vector<16xf32>
    %50 = vector.shape_cast %49 : vector<16xf32> to vector<16x1xf32>
    %cst_32 = arith.constant 1.562500e-02 : f32
    %51 = vector.broadcast %cst_32 : f32 to vector<16x1xf32>
    %52 = arith.mulf %47, %51 : vector<16x1xf32>
    %cst_33 = arith.constant 1.562500e-02 : f32
    %53 = vector.broadcast %cst_33 : f32 to vector<16x1xf32>
    %54 = arith.mulf %50, %53 : vector<16x1xf32>
    %55 = arith.mulf %52, %52 : vector<16x1xf32>
    %56 = arith.subf %54, %55 : vector<16x1xf32>
    %cst_34 = arith.constant 0.000000e+00 : f32
    %57 = vector.broadcast %cst_34 : f32 to vector<16x1xf32>
    %58 = arith.maximumf %56, %57 : vector<16x1xf32>
    %59 = vector.broadcast %52 : vector<16x1xf32> to vector<16x128xf32>
    %60 = arith.subf %45, %59 : vector<16x128xf32>
    %cst_35 = arith.constant 9.99999974E-6 : f32
    %61 = vector.broadcast %cst_35 : f32 to vector<16x1xf32>
    %62 = arith.addf %58, %61 : vector<16x1xf32>
    %63 = math.rsqrt %62 : vector<16x1xf32>
    %64 = vector.broadcast %63 : vector<16x1xf32> to vector<16x128xf32>
    %65 = arith.mulf %60, %64 : vector<16x128xf32>
    %66 = vector.broadcast %6 : vector<1x128xf32> to vector<16x128xf32>
    %67 = arith.mulf %65, %66 : vector<16x128xf32>
    %68 = vector.broadcast %7 : vector<1x128xf32> to vector<16x128xf32>
    %69 = arith.addf %67, %68 : vector<16x128xf32>
    %70 = arith.truncf %69 : vector<16x128xf32> to vector<16x128xbf16>
    %cst_36 = arith.constant dense<0.000000e+00> : vector<16x128xf32>
    %71 = tpu.matmul %70, %8, %cst_36 {dimension_numbers = #tpu.dot_dimension_numbers<[1], [0], [0], [1], [0, 0, 1, 1], [], []>} : vector<16x128xbf16>, vector<128x128xbf16>, vector<16x128xf32> -> vector<16x128xf32>
    %72 = vector.broadcast %9 : vector<1x128xf32> to vector<16x128xf32>
    %73 = arith.addf %71, %72 : vector<16x128xf32>
    %c0_37 = arith.constant 0 : index
    %c0_38 = arith.constant 0 : index
    %74 = vector.load %arg12[%c0_37, %c0_38] : memref<16x128xf32, #tpu.memory_space<vmem>>, vector<16x128xf32>
    tpu.vector_store %arg12[%c0_37, %c0_38], %73 {strides = array<i32>} : memref<16x128xf32, #tpu.memory_space<vmem>>, vector<16x128xf32>,
    return
  }
  func.func @transform_0(%arg0: i32) -> (i32, i32) {
    %c0_i32 = arith.constant 0 : i32
    %c0_i32_0 = arith.constant 0 : i32
    return %arg0, %c0_i32 : i32, i32
  }
  func.func @transform_1(%arg0: i32) -> (i32, i32) {
    %c0_i32 = arith.constant 0 : i32
    %c0_i32_0 = arith.constant 0 : i32
    %c0_i32_1 = arith.constant 0 : i32
    return %c0_i32, %c0_i32_0 : i32, i32
  }
  func.func @transform_2(%arg0: i32) -> (i32, i32) {
    %c0_i32 = arith.constant 0 : i32
    %c0_i32_0 = arith.constant 0 : i32
    %c0_i32_1 = arith.constant 0 : i32
    return %c0_i32, %c0_i32_0 : i32, i32
  }
  func.func @transform_3(%arg0: i32) -> (i32, i32) {
    %c0_i32 = arith.constant 0 : i32
    %c0_i32_0 = arith.constant 0 : i32
    %c0_i32_1 = arith.constant 0 : i32
    return %c0_i32, %c0_i32_0 : i32, i32
  }
  func.func @transform_4(%arg0: i32) -> (i32, i32) {
    %c0_i32 = arith.constant 0 : i32
    %c0_i32_0 = arith.constant 0 : i32
    %c0_i32_1 = arith.constant 0 : i32
    return %c0_i32, %c0_i32_0 : i32, i32
  }
  func.func @transform_5(%arg0: i32) -> (i32, i32) {
    %c0_i32 = arith.constant 0 : i32
    %c0_i32_0 = arith.constant 0 : i32
    %c0_i32_1 = arith.constant 0 : i32
    return %c0_i32, %c0_i32_0 : i32, i32
  }
  func.func @transform_6(%arg0: i32) -> (i32, i32) {
    %c0_i32 = arith.constant 0 : i32
    %c0_i32_0 = arith.constant 0 : i32
    %c0_i32_1 = arith.constant 0 : i32
    return %c0_i32, %c0_i32_0 : i32, i32
  }
  func.func @transform_7(%arg0: i32) -> (i32, i32) {
    %c0_i32 = arith.constant 0 : i32
    %c0_i32_0 = arith.constant 0 : i32
    %c0_i32_1 = arith.constant 0 : i32
    return %c0_i32, %c0_i32_0 : i32, i32
  }
  func.func @transform_8(%arg0: i32) -> (i32, i32) {
    %c0_i32 = arith.constant 0 : i32
    %c0_i32_0 = arith.constant 0 : i32
    %c0_i32_1 = arith.constant 0 : i32
    return %c0_i32, %c0_i32_0 : i32, i32
  }
  func.func @transform_9(%arg0: i32) -> (i32, i32) {
    %c0_i32 = arith.constant 0 : i32
    %c0_i32_0 = arith.constant 0 : i32
    %c0_i32_1 = arith.constant 0 : i32
    return %c0_i32, %c0_i32_0 : i32, i32
  }
  func.func @transform_10(%arg0: i32) -> (i32, i32) {
    %c0_i32 = arith.constant 0 : i32
    %c0_i32_0 = arith.constant 0 : i32
    %c0_i32_1 = arith.constant 0 : i32
    return %c0_i32, %c0_i32_0 : i32, i32
  }
  func.func @transform_11(%arg0: i32) -> (i32, i32) {
    %c0_i32 = arith.constant 0 : i32
    %c0_i32_0 = arith.constant 0 : i32
    return %arg0, %c0_i32 : i32, i32
  }
}

</mosaic_0001>

<bundles_post_ra>
// kernel: tpu_custom_call.1
= control target key start
LH: loop header
LB: loop body
LE: loop exit
PB: predicated region body
PF: predicated region fallthrough
CT: control target
= control target key end

     0   :  { %16 = vsyncpa [#allocation3], 0  ;;  %s978_s0 = inlined_call_operand.hbm [shape: bf16[16,128], index: 0, kind: input, shape index: {}]   ;;  %s979_s1 = inlined_call_operand.hbm [shape: bf16[128,128], index: 1, kind: input, shape index: {}]   ;;  %s980_s2 = inlined_call_operand.vmem [shape: f32[1,128], index: 2, kind: input, shape index: {}]   ;;  %s981_s3 = inlined_call_operand.vmem [shape: f32[1,128], index: 3, kind: input, shape index: {}]   ;;  %s982_s4 = inlined_call_operand.vmem [shape: f32[1,128], index: 4, kind: input, shape index: {}]   ;;  %s983_s5 = inlined_call_operand.hbm [shape: bf16[128,128], index: 5, kind: input, shape index: {}]   ;;  %s984_s6 = inlined_call_operand.vmem [shape: f32[1,128], index: 6, kind: input, shape index: {}]   ;;  %s985_s7 = inlined_call_operand.vmem [shape: f32[1,128], index: 7, kind: input, shape index: {}]   ;;  %s986_s8 = inlined_call_operand.vmem [shape: f32[1,128], index: 8, kind: input, shape index: {}]   ;;  %s987_s9 = inlined_call_operand.hbm [shape: bf16[128,128], index: 9, kind: input, shape index: {}]   ;;  %s988_s10 = inlined_call_operand.vmem [shape: f32[1,128], index: 10, kind: input, shape index: {}]   ;;  %s989_s11 = inlined_call_operand.hbm [shape: f32[16,128], index: 11, kind: output, shape index: {}]  }
   0x1   :  { %17 = vsyncpa [#allocation6], 0 }
   0x2   :  { %18 = vsyncpa [#allocation9], 0 }
   0x3   :  { %19 = vsyncpa [#allocation4], 0  ;;  %s829_s17 = smov [#allocation5]   ;;  %s830_s19 = smov [#allocation2]  }
   0x4   :  { %s37_s18 = sshll.u32 %s829_s17, 4  ;;  %s25_s20 = sshll.u32 %s830_s19, 4  ;;  %s38_s18 = int_to_ptr.vmem [resolvable:$true] %s37_s18  ;;  %s26_s20 = int_to_ptr.vmem [resolvable:$true] %s25_s20 }
   0x5   :  { %s729_s21 = scalar_lea.vmem %s38_s18, 1024  ;;  %p734_p1 = scmp.lt.s32.totalorder %s38_s18, %s38_s18 }
   0x6   :  { %p730_p0 = scmp.ne.s32.totalorder %s38_s18, %s729_s21  ;;  %p735_p2 = scmp.lt.s32.totalorder %s729_s21, %s729_s21 }
   0x8   :  { %p736_p3 = por %p735_p2, %p734_p1 }
   0xa   :  { %p737_p4 = pnand %p736_p3, %p730_p0 }
   0xc   :  { %740 = shalt.err (!%p737_p4)
}
   0xd   :  { %s831_s22 = smov 64   ;;  %s832_s23 = smov 4  }
   0xe   :  { %43 = dma.hbm_to_vmem [thread:$0]  %s979_s1, 1024, %s38_s18, [#allocation6], %s831_s22, %s831_s22, %s832_s23  }
   0xf   :  { %s749_s26 = scalar_lea.vmem %s26_s20, 128  ;;  %p754_p6 = scmp.lt.s32.totalorder %s26_s20, %s26_s20 }
  0x10   :  { %p750_p5 = scmp.ne.s32.totalorder %s26_s20, %s749_s26  ;;  %p755_p7 = scmp.lt.s32.totalorder %s749_s26, %s749_s26 }
  0x12   :  { %p756_p8 = por %p755_p7, %p754_p6 }
  0x14   :  { %p757_p9 = pnand %p756_p8, %p750_p5 }
  0x16   :  { %760 = shalt.err (!%p757_p9)
}
  0x17   :  { %31 = dma.hbm_to_vmem [thread:$0]  %s978_s0, 128, %s26_s20, [#allocation3], %s831_s22, %s831_s22, %s832_s23  }
  0x18   :  { %s833_s29 = smov [#allocation7]   ;;  %s834_s12 = smov [#allocation8]  }
  0x19   :  { %s55_s30 = sshll.u32 %s833_s29, 4  ;;  %s73_s13 = sshll.u32 %s834_s12, 4  ;;  %s56_s30 = int_to_ptr.vmem [resolvable:$true] %s55_s30  ;;  %s74_s13 = int_to_ptr.vmem [resolvable:$true] %s73_s13 }
  0x1a   :  { %s769_s1 = scalar_lea.vmem %s56_s30, 1024  ;;  %p774_p11 = scmp.lt.s32.totalorder %s56_s30, %s56_s30 }
  0x1b   :  { %p770_p10 = scmp.ne.s32.totalorder %s56_s30, %s769_s1  ;;  %p775_p12 = scmp.lt.s32.totalorder %s769_s1, %s769_s1 }
  0x1d   :  { %p776_p13 = por %p775_p12, %p774_p11 }
  0x1f   :  { %p777_p0 = pnand %p776_p13, %p770_p10 }
  0x21   :  { %780 = shalt.err (!%p777_p0)
}
  0x22   :  { %61 = dma.hbm_to_vmem [thread:$0]  %s983_s5, 1024, %s56_s30, [#allocation6], %s831_s22, %s831_s22, %s832_s23  }
  0x23   :  { %s789_s0 = scalar_lea.vmem %s74_s13, 1024  ;;  %p794_p2 = scmp.lt.s32.totalorder %s74_s13, %s74_s13 }
  0x24   :  { %p790_p1 = scmp.ne.s32.totalorder %s74_s13, %s789_s0  ;;  %p795_p3 = scmp.lt.s32.totalorder %s789_s0, %s789_s0 }
  0x26   :  { %p796_p4 = por %p795_p3, %p794_p2 }
  0x28   :  { %p797_p5 = pnand %p796_p4, %p790_p1 }
  0x2a   :  { %800 = shalt.err (!%p797_p5)
}
  0x2b   :  { %79 = dma.hbm_to_vmem [thread:$0]  %s987_s9, 1024, %s74_s13, [#allocation9], %s831_s22, %s831_s22, %s832_s23  }
  0x2c   :  { %821 = dma.done.wait [#allocation3], 128  }
  0x2d   :  { %822 = vsyncadd [#allocation3], 4294967168 }
  0x2e   :  { %823 = dma.done.wait [#allocation6], 2048  }
  0x2f   :  { %824 = vsyncadd [#allocation6], 4294965248 }
  0x30   :  { %825 = dma.done.wait [#allocation9], 1024  }
  0x31   :  { %826 = vsyncadd [#allocation9], 4294966272  ;;  %v835_v0 = vmov 0.0   ;;  %vm836_vm0 = vmmov 0   ;;  %v688_v1 = vld [vmem:[#allocation5 + $0x38] sm:$0xff]   ;;  %v689_v2 = vld [vmem:[#allocation5 + $0x30] sm:$0xff]  }
  0x32   :  { %617 = vmatprep.subr.bf16.mxu0 %v835_v0  ;;  %633 = vmatprep.mubr.msk.bf16.mxu0 %vm836_vm0, %v835_v0  ;;  %v690_v3 = vld [vmem:[#allocation5 + $0x28] sm:$0xff]   ;;  %v691_v4 = vld [vmem:[#allocation5 + $0x20] sm:$0xff]   ;;  %v692_v5 = vld [vmem:[#allocation5 + $0x18] sm:$0xff]  }
  0x33   :  { %637 = vmatprep.subr.bf16.mxu1 %v835_v0  ;;  %653 = vmatprep.mubr.msk.bf16.mxu1 %vm836_vm0, %v835_v0  ;;  %v693_v6 = vld [vmem:[#allocation5 + $0x10] sm:$0xff]   ;;  %v694_v7 = vld [vmem:[#allocation5 + $0x8] sm:$0xff]   ;;  %v695_v8 = vld [vmem:[#allocation5] sm:$0xff]  }
  0x34   :  { %618 = vmatpush3.bf16.msra.mxu0 %v688_v1  ;;  %v696_v9 = vld [vmem:[#allocation2] sm:$0xff]   ;;  %v698_v22 = vld [vmem:[#allocation7 + $0x30] sm:$0xff]   ;;  %v699_v23 = vld [vmem:[#allocation7 + $0x28] sm:$0xff]  }
  0x35   :  { %619 = vmatprep.subr.bf16.mxu0 %v835_v0  ;;  %v558_v10 = vld [vmem:[%s980_s2] ss:$0 sm:$0xff]  ;;  %v700_v24 = vld [vmem:[#allocation7 + $0x20] sm:$0xff]   ;;  %v702_v26 = vld [vmem:[#allocation7 + $0x10] sm:$0xff]  }
  0x36   :  { %v697_v21 = vld [vmem:[#allocation7 + $0x38] sm:$0xff]   ;;  %v703_v27 = vld [vmem:[#allocation7 + $0x8] sm:$0xff]   ;;  %v704_v28 = vld [vmem:[#allocation7] sm:$0xff]  }
  0x37   :  { %638 = vmatpush3.bf16.msra.mxu1 %v697_v21  ;;  %v701_v25 = vld [vmem:[#allocation7 + $0x18] sm:$0xff]  }
  0x38   :  { %620 = vmatpush3.bf16.msra.mxu0 %v689_v2  ;;  %639 = vmatprep.subr.bf16.mxu1 %v835_v0  ;;  %v568_v48 = vld [vmem:[%s981_s3] ss:$0 sm:$0xff] }
  0x39   :  { %621 = vmatprep.subr.bf16.mxu0 %v835_v0  ;;  %v569_v53 = vld [vmem:[%s982_s4] ss:$0 sm:$0xff] }
  0x3a   :  { %v570_v58 = vld [vmem:[%s984_s6] ss:$0 sm:$0xff] }
  0x3b   :  { %640 = vmatpush3.bf16.msra.mxu1 %v698_v22 }
  0x3c   :  { %622 = vmatpush3.bf16.msra.mxu0 %v690_v3  ;;  %641 = vmatprep.subr.bf16.mxu1 %v835_v0 }
  0x3d   :  { %623 = vmatprep.subr.bf16.mxu0 %v835_v0 }
  0x3f   :  { %642 = vmatpush3.bf16.msra.mxu1 %v699_v23 }
  0x40   :  { %624 = vmatpush3.bf16.msra.mxu0 %v691_v4  ;;  %643 = vmatprep.subr.bf16.mxu1 %v835_v0 }
  0x41   :  { %625 = vmatprep.subr.bf16.mxu0 %v835_v0 }
  0x43   :  { %644 = vmatpush3.bf16.msra.mxu1 %v700_v24 }
  0x44   :  { %626 = vmatpush3.bf16.msra.mxu0 %v692_v5  ;;  %645 = vmatprep.subr.bf16.mxu1 %v835_v0 }
  0x45   :  { %627 = vmatprep.subr.bf16.mxu0 %v835_v0 }
  0x47   :  { %646 = vmatpush3.bf16.msra.mxu1 %v701_v25 }
  0x48   :  { %628 = vmatpush3.bf16.msra.mxu0 %v693_v6  ;;  %647 = vmatprep.subr.bf16.mxu1 %v835_v0  ;;  %v705_v6 = vld [vmem:[#allocation8 + $0x38] sm:$0xff]  }
  0x49   :  { %629 = vmatprep.subr.bf16.mxu0 %v835_v0 }
  0x4b   :  { %648 = vmatpush3.bf16.msra.mxu1 %v702_v26 }
  0x4c   :  { %630 = vmatpush3.bf16.msra.mxu0 %v694_v7  ;;  %649 = vmatprep.subr.bf16.mxu1 %v835_v0  ;;  %v706_v7 = vld [vmem:[#allocation8 + $0x30] sm:$0xff]  }
  0x4d   :  { %631 = vmatprep.subr.bf16.mxu0 %v835_v0 }
  0x4f   :  { %650 = vmatpush3.bf16.msra.mxu1 %v703_v27 }
  0x50   :  { %632 = vmatpush3.bf16.msra.mxu0 %v695_v8  ;;  %651 = vmatprep.subr.bf16.mxu1 %v835_v0  ;;  %v707_v8 = vld [vmem:[#allocation8 + $0x28] sm:$0xff]  }
  0x51   :  { %657 = vmatprep.subr.bf16.mxu0 %v835_v0 }
  0x53   :  { %634 = vmatmul.mubr.bf16.vlgmr.msra.gmra.mxu0 %v696_v9  ;;  %652 = vmatpush3.bf16.msra.mxu1 %v704_v28  ;;  %v708_v9 = vld [vmem:[#allocation8 + $0x20] sm:$0xff]  }
  0x54   :  { %673 = vmatprep.mubr.msk.bf16.mxu0 %vm836_vm0, %v835_v0  ;;  %658 = vmatpush3.bf16.msra.mxu0 %v705_v6 }
  0x55   :  { %659 = vmatprep.subr.bf16.mxu0 %v835_v0 }
  0x58   :  { %660 = vmatpush3.bf16.msra.mxu0 %v706_v7 }
  0x59   :  { %661 = vmatprep.subr.bf16.mxu0 %v835_v0 }
  0x5c   :  { %662 = vmatpush3.bf16.msra.mxu0 %v707_v8 }
  0x5d   :  { %663 = vmatprep.subr.bf16.mxu0 %v835_v0 }
  0x60   :  { %664 = vmatpush3.bf16.msra.mxu0 %v708_v9 }
  0x61   :  { %665 = vmatprep.subr.bf16.mxu0 %v835_v0 }
 0x113   :  { %v246_v11 = vpop.f32.mrf.mxu0 }
 0x114   :  { %v247_v12 = vadd.f32 %v558_v10, %v246_v11  ;;  %v710_v11 = vld [vmem:[#allocation8 + $0x10] sm:$0xff]  }
 0x115   :  { %v635_v13 = vpop.f32.mrf.mxu0 }
 0x116   :  { %v253_v14 = vmax.f32 %v247_v12, 0.0  ;;  %v711_v12 = vld [vmem:[#allocation8 + $0x8] sm:$0xff]   ;;  %v712_v13 = vld [vmem:[#allocation8] sm:$0xff]  }
 0x117   :  { %v249_v15 = vpop.f32.mrf.mxu0 }
 0x118   :  { %v250_v16 = vadd.f32 %v558_v10, %v249_v15  ;;  %255 = vadd.xlane.f32.xlu0 %v253_v14  ;;  %v259_v17 = vmul.f32 %v253_v14, %v253_v14  ;;  %v709_v10 = vld [vmem:[#allocation8 + $0x18] sm:$0xff]  }
 0x119   :  { %v636_v18 = vpop.f32.mrf.mxu0  ;;  %666 = vmatpush3.bf16.msra.mxu0 %v709_v10 }
 0x11a   :  { %v254_v19 = vmax.f32 %v250_v16, 0.0  ;;  %261 = vadd.xlane.f32.xlu1 %v259_v17  ;;  %667 = vmatprep.subr.bf16.mxu0 %v835_v0 }
 0x11c   :  { %257 = vadd.xlane.f32.xlu0 %v254_v19  ;;  %v260_v20 = vmul.f32 %v254_v19, %v254_v19 }
 0x11d   :  { %668 = vmatpush3.bf16.msra.mxu0 %v710_v11 }
 0x11e   :  { %263 = vadd.xlane.f32.xlu1 %v260_v20  ;;  %669 = vmatprep.subr.bf16.mxu0 %v835_v0 }
 0x121   :  { %670 = vmatpush3.bf16.msra.mxu0 %v711_v12 }
 0x122   :  { %671 = vmatprep.subr.bf16.mxu0 %v835_v0 }
 0x125   :  { %672 = vmatpush3.bf16.msra.mxu0 %v712_v13 }
 0x1a1   :  { %v256_v29 = vpop.xlane.xlu0 %255 }
 0x1a2   :  { %v265_v30 = vmul.f32 0.015625, %v256_v29 }
 0x1a3   :  { %v262_v31 = vpop.xlane.xlu1 %261 }
 0x1a4   :  { %v269_v32 = vmul.f32 %v265_v30, %v265_v30  ;;  %v267_v33 = vmul.f32 0.015625, %v262_v31  ;;  %v275_v45 = vsub.f32 %v253_v14, %v265_v30 }
 0x1a5   :  { %v258_v34 = vpop.xlane.xlu0 %257 }
 0x1a6   :  { %v271_v35 = vsub.f32 %v267_v33, %v269_v32  ;;  %v266_v36 = vmul.f32 0.015625, %v258_v34  ;;  %v579_v32 = vld [vmem:[%s985_s7] ss:$0 sm:$0xff]  ;;  %s837_s7 = smov [#allocation10]  }
 0x1a7   :  { %v264_v37 = vpop.xlane.xlu1 %263  ;;  %s544_s26 = sshll.u32 %s837_s7, 4  ;;  %s545_s26 = int_to_ptr.vmem [resolvable:$true] %s544_s26 }
 0x1a8   :  { %v273_v38 = vmax.f32 %v271_v35, 0.0  ;;  %v270_v39 = vmul.f32 %v266_v36, %v266_v36  ;;  %v268_v40 = vmul.f32 0.015625, %v264_v37  ;;  %v276_v49 = vsub.f32 %v254_v19, %v266_v36  ;;  %v580_v37 = vld [vmem:[%s986_s8] ss:$0 sm:$0xff]  ;;  %s801_s8 = scalar_lea.vmem %s545_s26, 256  ;;  %p806_p7 = scmp.lt.s32.totalorder %s545_s26, %s545_s26 }
 0x1a9   :  { %p802_p6 = scmp.ne.s32.totalorder %s545_s26, %s801_s8  ;;  %p807_p8 = scmp.lt.s32.totalorder %s801_s8, %s801_s8 }
 0x1aa   :  { %v277_v41 = vadd.f32 1e-05, %v273_v38  ;;  %v272_v42 = vsub.f32 %v268_v40, %v270_v39 }
 0x1ab   :  { %p808_p9 = por %p807_p8, %p806_p7 }
 0x1ac   :  { %713 = vrsqrt.f32 %v277_v41  ;;  %v274_v43 = vmax.f32 %v272_v42, 0.0  ;;  %v581_v42 = vld [vmem:[%s988_s10] ss:$0 sm:$0xff] }
 0x1ad   :  { %p809_p10 = pnand %p808_p9, %p802_p6 }
 0x1ae   :  { %v278_v44 = vadd.f32 1e-05, %v274_v43 }
 0x1b0   :  { %715 = vrsqrt.f32 %v278_v44 }
 0x1b9   :  { %v714_v46 = vpop.eup %713 }
 0x1ba   :  { %v281_v47 = vmul.f32 %v714_v46, %v275_v45 }
 0x1bc   :  { %v289_v52 = vmul.f32 %v568_v48, %v281_v47 }
 0x1bd   :  { %v716_v50 = vpop.eup %715 }
 0x1be   :  { %v282_v51 = vmul.f32 %v716_v50, %v276_v49  ;;  %v297_v55 = vadd.f32 %v569_v53, %v289_v52 }
 0x1c0   :  { %v290_v54 = vmul.f32 %v568_v48, %v282_v51 }
 0x1c2   :  { %v298_v56 = vadd.f32 %v569_v53, %v290_v54 }
 0x1c4   :  { %v299_v57 = vpack.c.bf16 %v298_v56, %v297_v55 }
 0x1c6   :  { %654 = vmatmul.mubr.bf16.vlgmr.msra.gmra.mxu1 %v299_v57 }
 0x286   :  { %v388_v59 = vpop.f32.mrf.mxu1 }
 0x287   :  { %v389_v60 = vadd.f32 %v570_v58, %v388_v59 }
 0x288   :  { %v655_v61 = vpop.f32.mrf.mxu1 }
 0x289   :  { %v395_v62 = vmax.f32 %v389_v60, 0.0 }
 0x28a   :  { %v391_v63 = vpop.f32.mrf.mxu1 }
 0x28b   :  { %v392_v1 = vadd.f32 %v570_v58, %v391_v63  ;;  %397 = vadd.xlane.f32.xlu0 %v395_v62  ;;  %v401_v4 = vmul.f32 %v395_v62, %v395_v62 }
 0x28c   :  { %v656_v2 = vpop.f32.mrf.mxu1 }
 0x28d   :  { %v396_v3 = vmax.f32 %v392_v1, 0.0 }
 0x28f   :  { %403 = vadd.xlane.f32.xlu0 %v401_v4  ;;  %399 = vadd.xlane.f32.xlu1 %v396_v3  ;;  %v402_v5 = vmul.f32 %v396_v3, %v396_v3 }
 0x293   :  { %405 = vadd.xlane.f32.xlu1 %v402_v5 }
 0x314   :  { %v398_v14 = vpop.xlane.xlu0 %397 }
 0x315   :  { %v407_v15 = vmul.f32 0.015625, %v398_v14 }
 0x317   :  { %v411_v18 = vmul.f32 %v407_v15, %v407_v15  ;;  %v417_v0 = vsub.f32 %v395_v62, %v407_v15 }
 0x318   :  { %v404_v16 = vpop.xlane.xlu0 %403  ;;  %v400_v17 = vpop.xlane.xlu1 %399 }
 0x319   :  { %v409_v19 = vmul.f32 0.015625, %v404_v16  ;;  %v408_v20 = vmul.f32 0.015625, %v400_v17 }
 0x31b   :  { %v413_v21 = vsub.f32 %v409_v19, %v411_v18  ;;  %v412_v24 = vmul.f32 %v408_v20, %v408_v20  ;;  %v418_v33 = vsub.f32 %v396_v3, %v408_v20 }
 0x31c   :  { %v406_v22 = vpop.xlane.xlu1 %405 }
 0x31d   :  { %v415_v23 = vmax.f32 %v413_v21, 0.0  ;;  %v410_v25 = vmul.f32 0.015625, %v406_v22 }
 0x31f   :  { %v419_v26 = vadd.f32 1e-05, %v415_v23  ;;  %v414_v27 = vsub.f32 %v410_v25, %v412_v24 }
 0x321   :  { %717 = vrsqrt.f32 %v419_v26  ;;  %v416_v28 = vmax.f32 %v414_v27, 0.0 }
 0x323   :  { %v420_v29 = vadd.f32 1e-05, %v416_v28 }
 0x325   :  { %719 = vrsqrt.f32 %v420_v29 }
 0x32e   :  { %v718_v30 = vpop.eup %717 }
 0x32f   :  { %v423_v31 = vmul.f32 %v718_v30, %v417_v0 }
 0x331   :  { %v431_v36 = vmul.f32 %v579_v32, %v423_v31 }
 0x332   :  { %v720_v34 = vpop.eup %719 }
 0x333   :  { %v424_v35 = vmul.f32 %v720_v34, %v418_v33  ;;  %v439_v39 = vadd.f32 %v580_v37, %v431_v36 }
 0x335   :  { %v432_v38 = vmul.f32 %v579_v32, %v424_v35 }
 0x337   :  { %v440_v40 = vadd.f32 %v580_v37, %v432_v38 }
 0x339   :  { %v441_v41 = vpack.c.bf16 %v440_v40, %v439_v39 }
 0x33b   :  { %674 = vmatmul.mubr.bf16.vlgmr.msra.gmra.mxu0 %v441_v41 }
 0x3fb   :  { %v530_v43 = vpop.f32.mrf.mxu0 }
 0x3fc   :  { %v531_v44 = vadd.f32 %v581_v42, %v530_v43 }
 0x3fd   :  { %v675_v45 = vpop.f32.mrf.mxu0 }
 0x3fe   :  { %537 = vst [vmem:[#allocation10] sm:$0xff] %v531_v44 }
 0x3ff   :  { %v533_v46 = vpop.f32.mrf.mxu0 }
 0x400   :  { %v534_v47 = vadd.f32 %v581_v42, %v533_v46 }
 0x401   :  { %v676_v48 = vpop.f32.mrf.mxu0 }
 0x402   :  { %538 = vst [vmem:[#allocation10 + $0x8] sm:$0xff] %v534_v47 }
 0x403   :  { %812 = shalt.err (!%p809_p10)
}
 0x404   :  { %s838_s27 = smov 128   ;;  %s839_s10 = smov 8  }
 0x405   :  { %550 = dma.vmem_to_hbm [thread:$0]  %s545_s26, 256, %s989_s11, [#allocation4], %s838_s27, %s838_s27, %s839_s10  }
 0x406   :  { %827 = dma.done.wait [#allocation4], 256  }
 0x407   :  { %828 = vsyncadd [#allocation4], 4294967040 }
 0x408   :  { %554 = vsyncpa [#allocation3], 1 }
 0x409   :  { %555 = vsyncpa [#allocation6], 1 }
 0x40a   :  { %556 = vsyncpa [#allocation9], 1 }
 0x40b   :  { %557 = vsyncpa [#allocation4], 1 }

</bundles_post_ra>
